<compile_context>
chip_gen: v5e
topology: v5e:2x2
jax: 0.10.0
libtpu: 0.0.40
codegen_flags: <defaults>
</compile_context>

<pallas_src>
import functools

import jax
import jax.numpy as jnp
from jax.experimental import pallas as pl
from jax.experimental.pallas import tpu as pltpu

_LANE = 128
_MAX_BLOCK_ROWS = 1024  # 512 KiB/input/buffer in f32; safe on v5e/v6e/v7x


def _round_up(x, m):
    return -(-x // m) * m


def _class_mse_kernel(x_ref, t_ref, m_ref, out_ref, *,
                      thresholds, block_rows, total_rows, blocks_per_core,
                      sentinel):
    c = pl.program_id(0)          # which half of the row range (v7x TC split)
    b = pl.program_id(1)          # block within this half (reduction axis)

    @pl.when(b == 0)
    def _():
        out_ref[...] = jnp.zeros_like(out_ref)

    x = x_ref[...].astype(jnp.float32)
    t = t_ref[...].astype(jnp.float32)
    m = m_ref[...].astype(jnp.float32)

    # Row-validity mask. Handles (a) the ragged last block of each half and
    # (b) the fully out-of-range duplicate block a half may get when the total
    # block count is odd (its DMA index is clamped in the index_map; every row
    # is masked off here so it contributes nothing).
    start_row = (c * blocks_per_core + b) * block_rows
    rows_left = total_rows - start_row
    row_idx = jax.lax.broadcasted_iota(jnp.int32, (block_rows, _LANE), 0)
    valid = row_idx < rows_left

    # max(x, t) >= thre  <=>  OR(x >= thre, t >= thre). Invalid rows get the
    # sentinel (strictly below every threshold) so they fail every threshold.
    xmax = jnp.where(valid, jnp.maximum(x, t), sentinel)
    madiff = m * jnp.abs(x - t)

    parts = []
    for thre in thresholds:
        cond = xmax >= thre
        parts.append(jnp.sum(jnp.where(cond, madiff, 0.0), axis=0, keepdims=True))
        parts.append(jnp.sum(jnp.where(cond, 1.0, 0.0), axis=0, keepdims=True))
    out_ref[...] += jnp.concatenate(parts, axis=0)[None]


def class_mse_loss(inp, target, mask, thresholds=(30.0, 40.0, 50.0),
                   weights=None, *, max_block_rows=_MAX_BLOCK_ROWS):
    thresholds = tuple(float(t) for t in thresholds)
    n_th = len(thresholds)
    if weights is None:
        weights = (1.0,) * n_th
    weights = tuple(float(w) for w in weights)
    sentinel = min(thresholds) - 1.0

    x = inp.reshape(-1)
    t = target.reshape(-1)
    m = mask.reshape(-1)

    n = x.size
    pad = (-n) % _LANE
    if pad:
        # TODO(synk): this small pad copy is only taken when the element count
        # is not a multiple of 128 (the reshape below needs it); the common
        # case is a free bitcast with zero extra HBM traffic.
        x = jnp.pad(x, (0, pad), constant_values=sentinel)
        t = jnp.pad(t, (0, pad), constant_values=sentinel)
        m = jnp.pad(m, (0, pad), constant_values=0)
    x = x.reshape(-1, _LANE)
    t = t.reshape(-1, _LANE)
    m = m.reshape(-1, _LANE)

    rows = x.shape[0]
    if rows <= max_block_rows:
        block_rows = rows            # full-dim block (always a legal block dim)
    else:
        block_rows = _round_up(max_block_rows, 8)
    n_blocks = -(-rows // block_rows)
    blocks_per_core = -(-n_blocks // 2)        # 2-way split for v7x megacore
    grid = (2, blocks_per_core)

    def in_map(c, b):
        # Clamp so the duplicate block of an odd block count still issues a
        # legal DMA; the kernel masks it out via the row-validity check.
        return (jnp.minimum(c * blocks_per_core + b, n_blocks - 1), 0)

    kernel = functools.partial(
        _class_mse_kernel,
        thresholds=thresholds, block_rows=block_rows, total_rows=rows,
        blocks_per_core=blocks_per_core, sentinel=sentinel)

    in_spec = pl.BlockSpec((block_rows, _LANE), in_map)
    partials = pl.pallas_call(
        kernel,
        out_shape=jax.ShapeDtypeStruct((2, 2 * n_th, _LANE), jnp.float32),
        grid_spec=pltpu.PrefetchScalarGridSpec(
            num_scalar_prefetch=0,
            grid=grid,
            in_specs=[in_spec, in_spec, in_spec],
            # per-core resident accumulator slice (same block across axis b)
            out_specs=pl.BlockSpec((1, 2 * n_th, _LANE), lambda c, b: (c, 0, 0)),
        ),
        compiler_params=pltpu.CompilerParams(
            dimension_semantics=("parallel", "arbitrary")),
    )(x, t, m)

    # Tiny final combine: reduce per-lane/per-core partials, divide, weight.
    # Kernel numerator omits weights[i], so it appears squared here
    # (matches: mae = sum(w_i*mask*mm*|d|)/(sum(mm)+eps); loss += w_i*mae).
    loss = 0.0
    for i in range(n_th):
        num = jnp.sum(partials[:, 2 * i, :])
        den = jnp.sum(partials[:, 2 * i + 1, :])
        loss = loss + (weights[i] * weights[i]) * num / (den + 1e-8)
    return loss / n_th * 0.01


def class_mse_ref(inp, target, mask, thresholds=(30.0, 40.0, 50.0), weights=None):
    """Pure-JAX reference reproducing the PyTorch forward exactly."""
    n_th = len(thresholds)
    if weights is None:
        weights = (1.0,) * n_th
    inp = inp.astype(jnp.float32)
    target = target.astype(jnp.float32)
    mask = mask.astype(jnp.float32)
    loss = 0.0
    for i, thre in enumerate(thresholds):
        maskin = jnp.where(inp >= thre, 1.0, 0.0)
        class_i = jnp.where(target >= thre, 1.0, 0.0)
        maskmerge = jnp.where(maskin + class_i >= 1.0, 1.0, 0.0)
        weight = weights[i] * mask
        mae = jnp.sum(weight * maskmerge * jnp.abs(inp - target)) / (jnp.sum(maskmerge) + 1e-8)
        loss = loss + mae * weights[i]
    return loss / n_th * 0.01


if __name__ == "__main__":
    def run_case(k, shape, **kw):
        k1, k2, k3 = jax.random.split(k, 3)
        inp = jax.random.uniform(k1, shape, jnp.float32, 0.0, 60.0)
        target = jax.random.uniform(k2, shape, jnp.float32, 0.0, 60.0)
        mask = (jax.random.uniform(k3, shape, jnp.float32) > 0.3).astype(jnp.float32)
        out = jax.block_until_ready(class_mse_loss(inp, target, mask, **kw))
        ref = class_mse_ref(inp, target, mask)
        assert jnp.allclose(out, ref, rtol=1e-5, atol=1e-7), (shape, out, ref)

    keys = jax.random.split(jax.random.PRNGKey(0), 4)
    # primary case: NCHW-like field, flat size multiple of 128, single block
    run_case(keys[0], (2, 4, 16, 16))
    # ragged element count -> pad-to-128 path
    run_case(keys[1], (2, 3, 17, 19))
    # multi-block + odd block count across the 2-way core split (clamped block)
    run_case(keys[2], (3, 4, 16, 16), max_block_rows=8)
    # ragged last block (rows not a multiple of the block) -> in-kernel mask
    run_case(keys[3], (2, 5, 128), max_block_rows=8)

    print("KERNEL_OK")
</pallas_src>

<mosaic_0001>
module attributes {stable_mosaic.version = 11 : i64} {
  func.func @_class_mse_kernel(%arg0: i32, %arg1: i32, %arg2: memref<16x128xf32, #tpu.memory_space<vmem>>, %arg3: memref<16x128xf32, #tpu.memory_space<vmem>>, %arg4: memref<16x128xf32, #tpu.memory_space<vmem>>, %arg5: memref<1x6x128xf32, #tpu.memory_space<vmem>>) attributes {dimension_semantics = [#tpu.dimension_semantics<parallel>, #tpu.dimension_semantics<arbitrary>], iteration_bounds = array<i64: 2, 1>, scalar_prefetch = 0 : i64, scratch_operands = 0 : i64, tpu.core_type = #tpu.core_type<tc>, window_params = [{transform_indices = @transform_0, window_bounds = array<i64: 16, 128>}, {transform_indices = @transform_1, window_bounds = array<i64: 16, 128>}, {transform_indices = @transform_2, window_bounds = array<i64: 16, 128>}, {transform_indices = @transform_3, window_bounds = array<i64: 1, 6, 128>}]} {
    %c0_i32 = arith.constant 0 : i32
    %0 = arith.cmpi eq, %arg1, %c0_i32 : i32
    %1 = arith.extui %0 : i1 to i32
    %c0_i32_0 = arith.constant 0 : i32
    %2 = arith.cmpi ne, %1, %c0_i32_0 : i32
    scf.if %2 {
      %cst_31 = arith.constant 0.000000e+00 : f32
      %57 = vector.broadcast %cst_31 : f32 to vector<1x6x128xf32>
      %c0_32 = arith.constant 0 : index
      %c0_33 = arith.constant 0 : index
      %c0_34 = arith.constant 0 : index
      %58 = vector.load %arg5[%c0_32, %c0_33, %c0_34] : memref<1x6x128xf32, #tpu.memory_space<vmem>>, vector<1x6x128xf32>
      tpu.vector_store %arg5[%c0_32, %c0_33, %c0_34], %57 {strides = array<i32>} : memref<1x6x128xf32, #tpu.memory_space<vmem>>, vector<1x6x128xf32>,
    } else {
    }
    %c0 = arith.constant 0 : index
    %c0_1 = arith.constant 0 : index
    %3 = vector.load %arg2[%c0, %c0_1] : memref<16x128xf32, #tpu.memory_space<vmem>>, vector<16x128xf32>
    %c0_2 = arith.constant 0 : index
    %c0_3 = arith.constant 0 : index
    %4 = vector.load %arg3[%c0_2, %c0_3] : memref<16x128xf32, #tpu.memory_space<vmem>>, vector<16x128xf32>
    %c0_4 = arith.constant 0 : index
    %c0_5 = arith.constant 0 : index
    %5 = vector.load %arg4[%c0_4, %c0_5] : memref<16x128xf32, #tpu.memory_space<vmem>>, vector<16x128xf32>
    %c1_i32 = arith.constant 1 : i32
    %6 = arith.muli %arg0, %c1_i32 : i32
    %7 = arith.addi %6, %arg1 : i32
    %c16_i32 = arith.constant 16 : i32
    %8 = arith.muli %7, %c16_i32 : i32
    %c16_i32_6 = arith.constant 16 : i32
    %9 = arith.subi %c16_i32_6, %8 : i32
    %10 = tpu.iota {dimensions = array<i32: 0>} : vector<16x128xi32>
    %11 = vector.broadcast %9 : i32 to vector<16x128xi32>
    %12 = arith.cmpi slt, %10, %11 : vector<16x128xi32>
    %13 = arith.maximumf %3, %4 : vector<16x128xf32>
    %cst = arith.constant 2.900000e+01 : f32
    %14 = vector.broadcast %cst : f32 to vector<16x128xf32>
    %15 = arith.select %12, %13, %14 : vector<16x128xi1>, vector<16x128xf32>
    %16 = arith.subf %3, %4 : vector<16x128xf32>
    %17 = math.absf %16 : vector<16x128xf32>
    %18 = arith.mulf %5, %17 : vector<16x128xf32>
    %cst_7 = arith.constant 3.000000e+01 : f32
    %19 = vector.broadcast %cst_7 : f32 to vector<16x128xf32>
    %20 = arith.cmpf oge, %15, %19 : vector<16x128xf32>
    %cst_8 = arith.constant 0.000000e+00 : f32
    %21 = vector.broadcast %cst_8 : f32 to vector<16x128xf32>
    %22 = arith.select %20, %18, %21 : vector<16x128xi1>, vector<16x128xf32>
    %cst_9 = arith.constant dense<0.000000e+00> : vector<128xf32>
    %23 = vector.multi_reduction <add>, %22, %cst_9 [0] : vector<16x128xf32> to vector<128xf32>
    %24 = vector.shape_cast %23 : vector<128xf32> to vector<1x128xf32>
    %cst_10 = arith.constant 1.000000e+00 : f32
    %cst_11 = arith.constant 0.000000e+00 : f32
    %25 = vector.broadcast %cst_10 : f32 to vector<16x128xf32>
    %26 = vector.broadcast %cst_11 : f32 to vector<16x128xf32>
    %27 = arith.select %20, %25, %26 : vector<16x128xi1>, vector<16x128xf32>
    %cst_12 = arith.constant dense<0.000000e+00> : vector<128xf32>
    %28 = vector.multi_reduction <add>, %27, %cst_12 [0] : vector<16x128xf32> to vector<128xf32>
    %29 = vector.shape_cast %28 : vector<128xf32> to vector<1x128xf32>
    %cst_13 = arith.constant 4.000000e+01 : f32
    %30 = vector.broadcast %cst_13 : f32 to vector<16x128xf32>
    %31 = arith.cmpf oge, %15, %30 : vector<16x128xf32>
    %cst_14 = arith.constant 0.000000e+00 : f32
    %32 = vector.broadcast %cst_14 : f32 to vector<16x128xf32>
    %33 = arith.select %31, %18, %32 : vector<16x128xi1>, vector<16x128xf32>
    %cst_15 = arith.constant dense<0.000000e+00> : vector<128xf32>
    %34 = vector.multi_reduction <add>, %33, %cst_15 [0] : vector<16x128xf32> to vector<128xf32>
    %35 = vector.shape_cast %34 : vector<128xf32> to vector<1x128xf32>
    %cst_16 = arith.constant 1.000000e+00 : f32
    %cst_17 = arith.constant 0.000000e+00 : f32
    %36 = vector.broadcast %cst_16 : f32 to vector<16x128xf32>
    %37 = vector.broadcast %cst_17 : f32 to vector<16x128xf32>
    %38 = arith.select %31, %36, %37 : vector<16x128xi1>, vector<16x128xf32>
    %cst_18 = arith.constant dense<0.000000e+00> : vector<128xf32>
    %39 = vector.multi_reduction <add>, %38, %cst_18 [0] : vector<16x128xf32> to vector<128xf32>
    %40 = vector.shape_cast %39 : vector<128xf32> to vector<1x128xf32>
    %cst_19 = arith.constant 5.000000e+01 : f32
    %41 = vector.broadcast %cst_19 : f32 to vector<16x128xf32>
    %42 = arith.cmpf oge, %15, %41 : vector<16x128xf32>
    %cst_20 = arith.constant 0.000000e+00 : f32
    %43 = vector.broadcast %cst_20 : f32 to vector<16x128xf32>
    %44 = arith.select %42, %18, %43 : vector<16x128xi1>, vector<16x128xf32>
    %cst_21 = arith.constant dense<0.000000e+00> : vector<128xf32>
    %45 = vector.multi_reduction <add>, %44, %cst_21 [0] : vector<16x128xf32> to vector<128xf32>
    %46 = vector.shape_cast %45 : vector<128xf32> to vector<1x128xf32>
    %cst_22 = arith.constant 1.000000e+00 : f32
    %cst_23 = arith.constant 0.000000e+00 : f32
    %47 = vector.broadcast %cst_22 : f32 to vector<16x128xf32>
    %48 = vector.broadcast %cst_23 : f32 to vector<16x128xf32>
    %49 = arith.select %42, %47, %48 : vector<16x128xi1>, vector<16x128xf32>
    %cst_24 = arith.constant dense<0.000000e+00> : vector<128xf32>
    %50 = vector.multi_reduction <add>, %49, %cst_24 [0] : vector<16x128xf32> to vector<128xf32>
    %51 = vector.shape_cast %50 : vector<128xf32> to vector<1x128xf32>
    %c0_25 = arith.constant 0 : index
    %c0_26 = arith.constant 0 : index
    %c0_27 = arith.constant 0 : index
    %52 = vector.load %arg5[%c0_25, %c0_26, %c0_27] : memref<1x6x128xf32, #tpu.memory_space<vmem>>, vector<1x6x128xf32>
    %53 = tpu.concatenate %24, %29, %35, %40, %46, %51 in 0 : vector<1x128xf32>, vector<1x128xf32>, vector<1x128xf32>, vector<1x128xf32>, vector<1x128xf32>, vector<1x128xf32> -> vector<6x128xf32>
    %54 = vector.shape_cast %53 : vector<6x128xf32> to vector<1x6x128xf32>
    %55 = arith.addf %52, %54 : vector<1x6x128xf32>
    %c0_28 = arith.constant 0 : index
    %c0_29 = arith.constant 0 : index
    %c0_30 = arith.constant 0 : index
    %56 = vector.load %arg5[%c0_28, %c0_29, %c0_30] : memref<1x6x128xf32, #tpu.memory_space<vmem>>, vector<1x6x128xf32>
    tpu.vector_store %arg5[%c0_28, %c0_29, %c0_30], %55 {strides = array<i32>} : memref<1x6x128xf32, #tpu.memory_space<vmem>>, vector<1x6x128xf32>,
    return
  }
  func.func @transform_0(%arg0: i32, %arg1: i32) -> (i32, i32) {
    %c1_i32 = arith.constant 1 : i32
    %0 = arith.muli %arg0, %c1_i32 : i32
    %1 = arith.addi %0, %arg1 : i32
    %c0_i32 = arith.constant 0 : i32
    %2 = arith.minsi %1, %c0_i32 : i32
    %c0_i32_0 = arith.constant 0 : i32
    %c0_i32_1 = arith.constant 0 : i32
    return %2, %c0_i32_0 : i32, i32
  }
  func.func @transform_1(%arg0: i32, %arg1: i32) -> (i32, i32) {
    %c1_i32 = arith.constant 1 : i32
    %0 = arith.muli %arg0, %c1_i32 : i32
    %1 = arith.addi %0, %arg1 : i32
    %c0_i32 = arith.constant 0 : i32
    %2 = arith.minsi %1, %c0_i32 : i32
    %c0_i32_0 = arith.constant 0 : i32
    %c0_i32_1 = arith.constant 0 : i32
    return %2, %c0_i32_0 : i32, i32
  }
  func.func @transform_2(%arg0: i32, %arg1: i32) -> (i32, i32) {
    %c1_i32 = arith.constant 1 : i32
    %0 = arith.muli %arg0, %c1_i32 : i32
    %1 = arith.addi %0, %arg1 : i32
    %c0_i32 = arith.constant 0 : i32
    %2 = arith.minsi %1, %c0_i32 : i32
    %c0_i32_0 = arith.constant 0 : i32
    %c0_i32_1 = arith.constant 0 : i32
    return %2, %c0_i32_0 : i32, i32
  }
  func.func @transform_3(%arg0: i32, %arg1: i32) -> (i32, i32, i32) {
    %c0_i32 = arith.constant 0 : i32
    %c0_i32_0 = arith.constant 0 : i32
    %c0_i32_1 = arith.constant 0 : i32
    return %arg0, %c0_i32, %c0_i32_0 : i32, i32, i32
  }
}

</mosaic_0001>

<bundles_post_ra>
// kernel: tpu_custom_call.1
= control target key start
LH: loop header
LB: loop body
LE: loop exit
PB: predicated region body
PF: predicated region fallthrough
CT: control target
= control target key end

     0   :  { %8 = vsyncpa [#allocation3], 0  ;;  %s944_s0 = inlined_call_operand.hbm [shape: f32[16,128], index: 0, kind: input, shape index: {}]   ;;  %s945_s1 = inlined_call_operand.hbm [shape: f32[16,128], index: 1, kind: input, shape index: {}]   ;;  %s946_s2 = inlined_call_operand.hbm [shape: f32[16,128], index: 2, kind: input, shape index: {}]   ;;  %s947_s3 = inlined_call_operand.vmem [shape: f32[2,6,128], index: 3, kind: output, shape index: {}]  }
   0x1   :  { %10 = vsyncpa [#allocation3 + $0x1], 0 }
   0x2   :  { %11 = vsyncpa [#allocation5], 0 }
   0x3   :  { %13 = vsyncpa [#allocation5 + $0x1], 0  ;;  %s803_s12 = smov 0   ;;  %s805_s13 = smov 0  }
   0x4   :  { %s807_s14 = smov 0   ;;  %s809_s15 = smov 0  }
   0x5   :  { %s811_s16 = smov 0  }
   0x6 LB: > { %s542_s17 = sadd.s32 4294967295, %s775_s16   ;;  %s31_s18 = sadd.s32 1, %s771_s15  ;;  %s775_s16 = sphi %s811_s16, %s19_s16   ;;  %s771_s15 = sphi %s809_s15, %s953_s15   ;;  %s767_s14 = sphi %s807_s14, %s952_s14   ;;  %s763_s13 = sphi %s805_s13, %s934_s13   ;;  %s759_s12 = sphi %s803_s12, %s951_s12  }
   0x7   : > { %p33_p0 = scmp.ge.s32.totalorder %s31_s18, 2  ;;  %p756_p1 = scmp.ne.s32.totalorder %s763_s13, 0 }
   0x8   : > { %p52_p2 = scmp.eq.s32.totalorder %s775_s16, 0  ;;  %p57_p3 = scmp.ne.s32.totalorder %s763_s13, %s759_s12 }
   0x9   : > { %s955_s18 = smov (%p33_p0, %s31_s18), 0  ;;  %p58_p4 = scmp.eq.s32.totalorder %s542_s17, 0 }
   0xa   : > { %p53_p5 = por %p756_p1, %p52_p2  ;;  %p582_p7 = scmp.lt.s32.totalorder %s775_s16, 2 }
   0xb   : > { %p835_p6 = por %p58_p4, %p57_p3  ;;  %s196_s21 = sand.u32 1, %s775_s16  }
   0xc   : > { %p840_p8 = pnand %p582_p7, %p53_p5  ;;  %s777_s22 = smov [#allocation4]  }
   0xd   : > { %s211_s23 = sshll.u32 %s777_s22, 4  ;;  %s209_s26 = sshll.u32 %s945_s1, 4  ;;  %s212_s23 = int_to_ptr.vmem [resolvable:$true] %s211_s23  ;;  %s210_s26 = int_to_ptr.hbm [resolvable:$true] %s209_s26 }
   0xe   : > { %p555_p9 = scmp.ge.s32.totalorder %s775_s16, 1  ;;  %s849_s27 = scalar_lea.sflag [#allocation5], %s196_s21 }
   0xf   : > { %s634_s28 = sshra.s32 %s210_s26, 4  ;;  %p638_p11 = pneg %p840_p8  ;;  %s635_s28 = int_to_ptr.hbm [resolvable:$true] %s634_s28 }
  0x10   : > { %s636_s29 = scalar_lea.hbm %s635_s28, 16  ;;  %s641_s5 = scalar_lea.hbm %s945_s1, 16 }
  0x11   : > { %p637_p10 = scmp.ne.s32.totalorder %s635_s28, %s636_s29  ;;  %p643_p0 = scmp.lt.s32.totalorder %s641_s5, %s636_s29 }
  0x13   : > { %p639_p12 = pnand %p638_p11, %p637_p10 }
  0x15   : > { %p640_p13 = pneg %p639_p12 }
  0x17   : > { %p645_p1 = pnand %p643_p0, %p640_p13 }
  0x19   : > { %648 = shalt.err (!%p645_p1)
}
  0x1a   : > { %s778_s6 = smov 128   ;;  %s779_s7 = smov 8  }
  0x1b   : > { %578 = dma.hbm_to_vmem [thread:$0]  (!%p840_p8), %s210_s26, 256, %s212_s23, %s849_s27, %s778_s6, %s778_s6, %s779_s7  }
  0x1c   : > { %p244_p2 = scmp.lt.s32.totalorder %s775_s16, 3  ;;  %s780_s9 = smov [#allocation2]  }
  0x1d   : > { %s186_s10 = sshll.u32 %s780_s9, 4  ;;  %s184_s21 = sshll.u32 %s944_s0, 4  ;;  %s187_s10 = int_to_ptr.vmem [resolvable:$true] %s186_s10  ;;  %s185_s21 = int_to_ptr.hbm [resolvable:$true] %s184_s21 }
  0x1e   : > { %p868_p3 = pnand %p555_p9, %p244_p2  ;;  %s664_s22 = sshra.s32 %s185_s21, 4  ;;  %s665_s22 = int_to_ptr.hbm [resolvable:$true] %s664_s22 }
  0x1f   : > { %s666_s24 = scalar_lea.hbm %s665_s22, 16  ;;  %s671_s26 = scalar_lea.hbm %s944_s0, 16 }
  0x20   : > { %p667_p4 = scmp.ne.s32.totalorder %s665_s22, %s666_s24  ;;  %p673_p9 = scmp.lt.s32.totalorder %s671_s26, %s666_s24 }
  0x22   : > { %p669_p5 = pnand %p667_p4, %p638_p11 }
  0x24   : > { %p670_p7 = pneg %p669_p5 }
  0x26   : > { %p675_p10 = pnand %p673_p9, %p670_p7 }
  0x28   : > { %678 = shalt.err (!%p675_p10)
}
  0x29   : > { %575 = dma.hbm_to_vmem [thread:$0]  (!%p840_p8), %s185_s21, 256, %s187_s10, [#allocation3], %s778_s6, %s778_s6, %s779_s7  }
  0x2a   : > { %s781_s28 = smov [#allocation6]   ;;  %s234_s5 = sshll.u32 %s946_s2, 4  ;;  %s235_s5 = int_to_ptr.hbm [resolvable:$true] %s234_s5 }
  0x2b   : > { %s236_s29 = sshll.u32 %s781_s28, 4  ;;  %s694_s9 = sshra.s32 %s235_s5, 4  ;;  %s237_s29 = int_to_ptr.vmem [resolvable:$true] %s236_s29  ;;  %s695_s9 = int_to_ptr.hbm [resolvable:$true] %s694_s9 }
  0x2c   : > { %s696_s11 = scalar_lea.hbm %s695_s9, 16  ;;  %s701_s10 = scalar_lea.hbm %s946_s2, 16 }
  0x2d   : > { %p697_p12 = scmp.ne.s32.totalorder %s695_s9, %s696_s11  ;;  %p703_p1 = scmp.lt.s32.totalorder %s701_s10, %s696_s11 }
  0x2f   : > { %p699_p13 = pnand %p697_p12, %p638_p11 }
  0x31   : > { %p700_p0 = pneg %p699_p13 }
  0x33   : > { %p705_p2 = pnand %p703_p1, %p700_p0 }
  0x35   : > { %708 = shalt.err (!%p705_p2)
}
  0x36   : > { %581 = dma.hbm_to_vmem [thread:$0]  (!%p840_p8), %s235_s5, 256, %s237_s29, %s849_s27, %s778_s6, %s778_s6, %s779_s7  }
  0x37   : > { %248 = sbr.rel (%p868_p3) target bundleno = 97 (0x61), region = 32  ;;  %s250_s21 = sand.u32 (!%p868_p3), 1, %s763_s13  }
  0x38   : > { %s904_s24 = sshll.u32 (!%p868_p3), %s250_s21, 4  ;;  %s251_s23 = scalar_lea.sflag (!%p868_p3), [#allocation3], %s250_s21 }
  0x39   : > { %s254_s25 = scalar_lea.vmem (!%p868_p3), [#allocation2], %s904_s24 }
  0x3c   : > { %749 = dma.done.wait (%p835_p6), %s251_s23, 256  }
  0x3d   : > { %751 = vsyncadd (%p835_p6), %s251_s23, 4294967040  ;;  %s260_s20 = sand.u32 1, %s542_s17   ;;  %s264_s6 = scalar_lea.vmem [#allocation4], %s904_s24 }
  0x3e   : > { %s261_s27 = scalar_lea.sflag [#allocation5], %s260_s20 }
  0x3f   : > { %753 = dma.done.wait (%p835_p6), %s261_s27, 512  }
  0x40   : > { %755 = vsyncadd (%p835_p6), %s261_s27, 4294966784  ;;  %p319_p8 = scmp.lt.s32.totalorder %s767_s14, 1  ;;  %v337_v0 = vlaneseq  ;;  %s560_s7 = sshll.u32 %s767_s14, 4  ;;  %v782_v4 = vmov 0.0   ;;  %v328_v5 = vld [vmem:[%s254_s25] sm:$0xff]  ;;  %v329_v6 = vld [vmem:[%s254_s25 + $0x8] sm:$0xff] }
  0x41   : > { %s336_s8 = ssub.s32 16, %s560_s7  ;;  %v330_v7 = vld [vmem:[%s264_s6] sm:$0xff]  ;;  %v331_v8 = vld [vmem:[%s264_s6 + $0x8] sm:$0xff]  ;;  %s274_s19 = scalar_lea.vmem [#allocation6], %s904_s24  ;;  %vm414_vm8 = vcmask 1040384   ;;  %vm416_vm9 = vcmask 1041408  }
  0x42   : > { %s957_s14 = smov (!%p319_p8, %s767_s14), 1  ;;  %v338_v1 = vshrl.u32 %v337_v0, 7  ;;  %v340_v3 = vstv %s336_s8  ;;  %v343_v9 = vmax.f32 %v328_v5, %v330_v7  ;;  %v347_v10 = vsub.f32 %v328_v5, %v330_v7  ;;  %v332_v11 = vld [vmem:[%s274_s19] sm:$0xff]  ;;  %v333_v14 = vld [vmem:[%s274_s19 + $0x8] sm:$0xff] }
  0x43   : > { %s559_s26 = sshll.u32 %s957_s14, 3  ;;  %v344_v12 = vmax.f32 %v329_v6, %v331_v8  ;;  %v348_v13 = vsub.f32 %v329_v6, %v331_v8  ;;  %vm418_vm10 = vcmask 1042432   ;;  %vm420_vm11 = vcmask 1043456  }
  0x44   : > { %v339_v2 = vadd.s32 8, %v338_v1  ;;  %s924_s29 = scalar_lea.vmem %s947_s3, %s559_s26  ;;  %vm341_vm0 = vcmp.lt.s32.totalorder %v338_v1, %v340_v3  ;;  %v349_v16 = vand.u32 2147483647, %v347_v10  ;;  %vm422_vm12 = vcmask 1044480  }
  0x45   : > { %327 = vst [vmem:[%s924_s29] sm:$0x3f] %v782_v4  ;;  %v345_v15 = vsel %vm341_vm0, %v343_v9, 29.0  ;;  %v350_v18 = vand.u32 2147483647, %v348_v13 }
  0x46   : > { %vm342_vm1 = vcmp.lt.s32.totalorder %v339_v2, %v340_v3  ;;  %vm353_vm2 = vcmp.ge.f32.partialorder %v345_v15, 30.0  ;;  %vm373_vm3 = vcmp.ge.f32.partialorder %v345_v15, 40.0  ;;  %v351_v19 = vmul.f32 %v349_v16, %v332_v11 }
  0x47   : > { %v346_v17 = vsel %vm342_vm1, %v344_v12, 29.0  ;;  %v364_v20 = vsel %vm353_vm2, 1.0, %v782_v4  ;;  %v352_v21 = vmul.f32 %v350_v18, %v333_v14  ;;  %v384_v23 = vsel %vm373_vm3, 1.0, %v782_v4 }
  0x48   : > { %vm354_vm4 = vcmp.ge.f32.partialorder %v346_v17, 30.0  ;;  %vm374_vm5 = vcmp.ge.f32.partialorder %v346_v17, 40.0  ;;  %v355_v25 = vsel %vm353_vm2, %v351_v19, 0.0  ;;  %v375_v27 = vsel %vm373_vm3, %v351_v19, 0.0 }
  0x49   : > { %v365_v22 = vsel %vm354_vm4, 1.0, %v782_v4  ;;  %v385_v24 = vsel %vm374_vm5, 1.0, %v782_v4  ;;  %v356_v29 = vsel %vm354_vm4, %v352_v21, 0.0  ;;  %v376_v30 = vsel %vm374_vm5, %v352_v21, 0.0 }
  0x4a   : > { %v366_v26 = vadd.f32 %v365_v22, %v364_v20  ;;  %v386_v28 = vadd.f32 %v385_v24, %v384_v23  ;;  %vm393_vm6 = vcmp.ge.f32.partialorder %v345_v15, 50.0  ;;  %vm394_vm7 = vcmp.ge.f32.partialorder %v346_v17, 50.0 }
  0x4b   : > { %v357_v31 = vadd.f32 %v356_v29, %v355_v25  ;;  %v377_v33 = vadd.f32 %v376_v30, %v375_v27  ;;  %v395_v35 = vsel %vm393_vm6, %v351_v19, 0.0  ;;  %v396_v36 = vsel %vm394_vm7, %v352_v21, 0.0 }
  0x4c   : > { %v367_v32 = vrot.slane %v366_v26, 4  ;;  %v387_v34 = vrot.slane %v386_v28, 4  ;;  %v404_v37 = vsel %vm393_vm6, 1.0, %v782_v4  ;;  %v405_v38 = vsel %vm394_vm7, 1.0, %v782_v4  ;;  %v413_v13 = vld [vmem:[%s924_s29] sm:$0x3f] }
  0x4d   : > { %v358_v39 = vrot.slane %v357_v31, 4  ;;  %v378_v41 = vrot.slane %v377_v33, 4  ;;  %v397_v43 = vadd.f32 %v396_v36, %v395_v35  ;;  %v406_v44 = vadd.f32 %v405_v38, %v404_v37 }
  0x4e   : > { %v368_v40 = vadd.f32 %v367_v32, %v366_v26  ;;  %v388_v42 = vadd.f32 %v387_v34, %v386_v28 }
  0x4f   : > { %v359_v45 = vadd.f32 %v358_v39, %v357_v31  ;;  %v379_v47 = vadd.f32 %v378_v41, %v377_v33  ;;  %v398_v49 = vrot.slane %v397_v43, 4  ;;  %v407_v50 = vrot.slane %v406_v44, 4 }
  0x50   : > { %v369_v46 = vrot.slane %v368_v40, 2  ;;  %v389_v48 = vrot.slane %v388_v42, 2 }
  0x51   : > { %v360_v51 = vrot.slane %v359_v45, 2  ;;  %v380_v53 = vrot.slane %v379_v47, 2  ;;  %v399_v55 = vadd.f32 %v398_v49, %v397_v43  ;;  %v408_v56 = vadd.f32 %v407_v50, %v406_v44 }
  0x52   : > { %v370_v52 = vadd.f32 %v369_v46, %v368_v40  ;;  %v390_v54 = vadd.f32 %v389_v48, %v388_v42 }
  0x53   : > { %v361_v57 = vadd.f32 %v360_v51, %v359_v45  ;;  %v381_v59 = vadd.f32 %v380_v53, %v379_v47  ;;  %v400_v61 = vrot.slane %v399_v55, 2  ;;  %v409_v62 = vrot.slane %v408_v56, 2 }
  0x54   : > { %v371_v58 = vrot.slane %v370_v52, 1  ;;  %v391_v60 = vrot.slane %v390_v54, 1 }
  0x55   : > { %v362_v63 = vrot.slane %v361_v57, 1  ;;  %v382_v1 = vrot.slane %v381_v59, 1  ;;  %v401_v2 = vadd.f32 %v400_v61, %v399_v55  ;;  %v410_v3 = vadd.f32 %v409_v62, %v408_v56 }
  0x56   : > { %v372_v0 = vadd.f32 %v371_v58, %v370_v52  ;;  %v392_v6 = vadd.f32 %v391_v60, %v390_v54 }
  0x57   : > { %v363_v4 = vadd.f32 %v362_v63, %v361_v57  ;;  %v383_v5 = vadd.f32 %v382_v1, %v381_v59  ;;  %v402_v7 = vrot.slane %v401_v2, 1  ;;  %v411_v8 = vrot.slane %v410_v3, 1 }
  0x59   : > { %v415_v9 = vsel %vm414_vm8, %v363_v4, %v372_v0  ;;  %v403_v10 = vadd.f32 %v402_v7, %v401_v2  ;;  %v412_v11 = vadd.f32 %v411_v8, %v410_v3 }
  0x5a   : > { %v417_v12 = vsel %vm416_vm9, %v415_v9, %v383_v5 }
  0x5b   : > { %v419_v14 = vsel %vm418_vm10, %v417_v12, %v392_v6 }
  0x5c   : > { %v421_v15 = vsel %vm420_vm11, %v419_v14, %v403_v10 }
  0x5d   : > { %v423_v16 = vsel %vm422_vm12, %v421_v15, %v412_v11 }
  0x5e   : > { %v424_v17 = vadd.f32 %v423_v16, %v413_v13 }
  0x60   : > { %425 = vst [vmem:[%s924_s29] sm:$0x3f] %v424_v17 }
  0x61 PF: > { %s19_s16 = sadd.s32 1, %s775_s16   ;;  %s951_s12 = smov %s763_s13 }
  0x62   : > { %p16_p6 = scmp.ge.s32.totalorder %s19_s16, 4   ;;  %s934_s13 = smov 0  }
  0x63   : > { %s952_s14 = smov %s771_s15  ;;  %s953_s15 = smov %s955_s18 }
  0x64   :  { %18 = sbr.rel (!%p16_p6) target bundleno = 6 (0x6), region = 100 }
  0x69   :  { %445 = vsyncpa [#allocation3], 1 }
  0x6a   :  { %447 = vsyncpa [#allocation3 + $0x1], 1 }
  0x6b   :  { %448 = vsyncpa [#allocation5], 1 }
  0x6c   :  { %450 = vsyncpa [#allocation5 + $0x1], 1 }

</bundles_post_ra>
